<compile_context>
chip_gen: v5e
topology: v5e:2x2
jax: 0.10.0
libtpu: 0.0.40
codegen_flags: <defaults>
</compile_context>

<pallas_src>
import jax
import jax.numpy as jnp
from jax.experimental import pallas as pl
from jax.experimental.pallas import tpu as pltpu


# ----------------------------------------------------------------------------
# Pallas kernels
# ----------------------------------------------------------------------------
def _edge_layer_kernel(xi_ref, xall_ref, adjn_ref, has_ref,
                       w1b_ref, w1d_ref, b1_ref, w2_ref, b2_ref, w3_ref, b3_ref,
                       out_ref):
    """One EdgeLayer, one tile of target nodes i:
       message = MLP(cat([x_i, x_j - x_i])), mean over neighbours j, trailing ReLU.

       Refactored: Linear3 is applied after the (linear) mean aggregation, and the
       aggregation itself is an MXU contraction with the row-normalized adjacency."""
    xi = xi_ref[...]                          # (TI, Cin)  target-node tile
    xall = xall_ref[...]                      # (N, Cin)   all nodes (source side)
    adjn = adjn_ref[...]                      # (TI, N)    adjacency rows / deg
    has = has_ref[...]                        # (TI, 1)    1.0 iff node has >=1 neighbour

    ti = xi.shape[0]
    n = xall.shape[0]
    hdim = w2_ref.shape[1]

    # cat([x_i, x_j - x_i]) @ W1 + b1  ==  x_i @ (W1i - W1d) + b1  +  x_j @ W1d
    base = jnp.dot(xi, w1b_ref[...], preferred_element_type=jnp.float32) + b1_ref[...]   # (TI, H)
    c_j = jnp.dot(xall, w1d_ref[...], preferred_element_type=jnp.float32)                # (N, H)

    h1 = jnp.maximum(base[:, None, :] + c_j[None, :, :], 0.0)        # (TI, N, H)
    h1 = h1.reshape(ti * n, hdim)
    h2 = jnp.dot(h1, w2_ref[...], preferred_element_type=jnp.float32) + b2_ref[...]
    h2 = jnp.maximum(h2, 0.0)                                        # (TI*N, H)

    # Mean over neighbours j on the MXU: agg[i, :] = adj_norm[i, :] @ h2[i, :, :]
    h2 = h2.reshape(ti, n, hdim)
    adjn3 = adjn.reshape(ti, 1, n)
    agg = jnp.einsum('tqn,tnh->tqh', adjn3, h2,
                     preferred_element_type=jnp.float32).reshape(ti, hdim)   # (TI, H)

    # Linear3 after aggregation; bias gated so isolated nodes stay exactly 0.
    out = jnp.dot(agg, w3_ref[...], preferred_element_type=jnp.float32) + has * b3_ref[...]
    out_ref[...] = jnp.maximum(out, 0.0)      # trailing x.relu() from ModelGNN.forward


def _readout_kernel(pool_ref, x_ref, u_ref, w1p_ref, w1u_ref, b1_ref,
                    w2_ref, b2_ref, w3_ref, b3_ref, out_ref):
    """global_mean_pool + cat([pool, u]) + 3-layer MLP -> (G, 1)."""
    meanpool = jnp.dot(pool_ref[...], x_ref[...],
                       preferred_element_type=jnp.float32)            # (G, L)
    z = (jnp.dot(meanpool, w1p_ref[...], preferred_element_type=jnp.float32)
         + jnp.dot(u_ref[...], w1u_ref[...], preferred_element_type=jnp.float32)
         + b1_ref[...])
    z = jnp.maximum(z, 0.0)
    z = jnp.dot(z, w2_ref[...], preferred_element_type=jnp.float32) + b2_ref[...]
    z = jnp.maximum(z, 0.0)
    out_ref[...] = (jnp.dot(z, w3_ref[...], preferred_element_type=jnp.float32)
                    + b3_ref[...])


_VMEM = pl.BlockSpec(memory_space=pltpu.MemorySpace.VMEM)


def _choose_tile_i(n, hidden, budget_bytes=8 << 20):
    """Largest i-tile (multiple of 8, divides N) whose h1/h2 slabs fit the budget."""
    cands = [t for t in range(8, n, 8) if n % t == 0] + [n]
    best = cands[0]
    for t in cands:
        if 2 * t * n * hidden * 4 <= budget_bytes:
            best = t
    return best


def edge_layer(x, adj_norm, has_nbr, params, *, tile_i=None):
    w1b, w1d, b1, w2, b2, w3, b3 = params
    n, cin = x.shape
    hidden = w2.shape[1]
    latent = w3.shape[1]
    if tile_i is None:
        tile_i = _choose_tile_i(n, hidden)
    grid = (n // tile_i,)

    weights = (w1b, w1d, b1, w2, b2, w3, b3)
    weight_bytes = sum(int(w.size) * 4 for w in weights)
    slab = tile_i * n * hidden * 4                       # one (TI, N, H) f32 slab
    need = (2 * slab                                      # h1 + h2
            + 4 * tile_i * (n + cin + latent + 1) * 4     # double-buffered i-tiles
            + 2 * n * cin * 4 + 2 * weight_bytes + (4 << 20))
    vmem_limit = int(min(48 << 20, max(32 << 20, 2 * need)))   # v7x-safe ceiling

    in_specs = [
        pl.BlockSpec((tile_i, cin), lambda i: (i, 0)),    # x, target-node tile
        pl.BlockSpec((n, cin), lambda i: (0, 0)),         # x, all source nodes
        pl.BlockSpec((tile_i, n), lambda i: (i, 0)),      # normalized adjacency rows
        pl.BlockSpec((tile_i, 1), lambda i: (i, 0)),      # has-neighbour mask
    ] + [pl.BlockSpec(w.shape, lambda i: (0, 0)) for w in weights]

    return pl.pallas_call(
        _edge_layer_kernel,
        out_shape=jax.ShapeDtypeStruct((n, latent), jnp.float32),
        grid=grid,
        in_specs=in_specs,
        out_specs=pl.BlockSpec((tile_i, latent), lambda i: (i, 0)),
        compiler_params=pltpu.CompilerParams(
            dimension_semantics=("parallel",),
            vmem_limit_bytes=vmem_limit),
    )(x, x, adj_norm, has_nbr, *weights)


def readout(poolmat, x, u, params):
    w1p, w1u, b1, w2, b2, w3, b3 = params
    g = poolmat.shape[0]
    return pl.pallas_call(
        _readout_kernel,
        out_shape=jax.ShapeDtypeStruct((g, 1), jnp.float32),
        in_specs=[_VMEM] * 10,
        out_specs=_VMEM,
    )(poolmat, x, u, w1p, w1u, b1, w2, b2, w3, b3)


# ----------------------------------------------------------------------------
# JAX glue: graph construction (radius_graph stand-in), pooling matrix, params
# ----------------------------------------------------------------------------
def radius_adjacency(pos, batch, r, loop=False):
    d2 = jnp.sum((pos[:, None, :] - pos[None, :, :]) ** 2, axis=-1)
    same = batch[:, None] == batch[None, :]
    mask = same & (d2 <= r * r)
    if not loop:
        mask = mask & ~jnp.eye(pos.shape[0], dtype=bool)
    return mask.astype(jnp.float32)


def mean_pool_matrix(batch, num_graphs):
    onehot = (batch[None, :] == jnp.arange(num_graphs)[:, None]).astype(jnp.float32)
    counts = jnp.sum(onehot, axis=1, keepdims=True)
    return onehot / jnp.maximum(counts, 1.0)      # (G, N)


def init_linear(key, fan_in, fan_out):
    kw, kb = jax.random.split(key)
    bound = 1.0 / jnp.sqrt(jnp.float32(fan_in))
    w = jax.random.uniform(kw, (fan_in, fan_out), jnp.float32, -bound, bound)
    b = jax.random.uniform(kb, (1, fan_out), jnp.float32, -bound, bound)
    return w, b


def init_model(key, node_features, global_features, n_layers, hidden, latent):
    keys = jax.random.split(key, 3 * n_layers + 3)
    raw_layers = []
    in_ch, ki = node_features, 0
    for _ in range(n_layers):
        w1, b1 = init_linear(keys[ki], 2 * in_ch, hidden); ki += 1
        w2, b2 = init_linear(keys[ki], hidden, hidden);    ki += 1
        w3, b3 = init_linear(keys[ki], hidden, latent);    ki += 1
        raw_layers.append((w1, b1, w2, b2, w3, b3, in_ch))
        in_ch = latent
    wl1, bl1 = init_linear(keys[ki], latent + global_features, latent); ki += 1
    wl2, bl2 = init_linear(keys[ki], latent, latent);                   ki += 1
    wl3, bl3 = init_linear(keys[ki], latent, 1);                        ki += 1
    return raw_layers, (wl1, bl1, wl2, bl2, wl3, bl3)


def prep_layer_params(raw_layers):
    prepped = []
    for (w1, b1, w2, b2, w3, b3, in_ch) in raw_layers:
        w1i, w1d = w1[:in_ch], w1[in_ch:]
        prepped.append((w1i - w1d, w1d, b1, w2, b2, w3, b3))   # W1base = W1i - W1d
    return prepped


def prep_readout_params(raw_readout, latent):
    wl1, bl1, wl2, bl2, wl3, bl3 = raw_readout
    return (wl1[:latent], wl1[latent:], bl1, wl2, bl2, wl3, bl3)


def model_gnn_forward(x, pos, batch, u, layer_params, readout_params,
                      *, r, num_graphs, loop=False, tile_i=None):
    adj = radius_adjacency(pos, batch, r, loop)             # (N, N)
    deg = jnp.sum(adj, axis=1, keepdims=True)               # (N, 1)
    adj_norm = adj / jnp.maximum(deg, 1.0)                  # rows sum to 1 (or 0)
    has_nbr = (deg > 0.0).astype(jnp.float32)               # (N, 1)
    h = x
    for params in layer_params:     # x = layer(x); x = x.relu()  (relu inside kernel)
        h = edge_layer(h, adj_norm, has_nbr, params, tile_i=tile_i)
    poolmat = mean_pool_matrix(batch, num_graphs)
    return readout(poolmat, h, u, readout_params)


# ----------------------------------------------------------------------------
# Pure-JAX reference (literal message -> mean -> relu order) for validation
# ----------------------------------------------------------------------------
def reference_forward(x, pos, batch, u, raw_layers, raw_readout,
                      *, r, num_graphs, loop=False):
    adj = radius_adjacency(pos, batch, r, loop)
    n = x.shape[0]
    h = x
    for (w1, b1, w2, b2, w3, b3, _in_ch) in raw_layers:
        c = h.shape[1]
        xi = jnp.broadcast_to(h[:, None, :], (n, n, c))
        xj = jnp.broadcast_to(h[None, :, :], (n, n, c))
        inp = jnp.concatenate([xi, xj - xi], axis=-1)
        m = jax.nn.relu(inp @ w1 + b1)
        m = jax.nn.relu(m @ w2 + b2)
        m = m @ w3 + b3                                       # (N, N, L)
        deg = jnp.sum(adj, axis=1, keepdims=True)
        agg = jnp.sum(adj[:, :, None] * m, axis=1) / jnp.maximum(deg, 1.0)
        h = jax.nn.relu(agg)
    pooled = mean_pool_matrix(batch, num_graphs) @ h
    z = jnp.concatenate([pooled, u], axis=1)
    wl1, bl1, wl2, bl2, wl3, bl3 = raw_readout
    z = jax.nn.relu(z @ wl1 + bl1)
    z = jax.nn.relu(z @ wl2 + bl2)
    return z @ wl3 + bl3


# ----------------------------------------------------------------------------
if __name__ == "__main__":
    key = jax.random.PRNGKey(0)

    node_features, global_features = 4, 2
    n_layers, hidden, latent = 2, 32, 16
    r = 0.5                                   # k_nn acts as the radius in radius_graph
    nodes_per_graph, num_graphs = 16, 2
    n_nodes = nodes_per_graph * num_graphs    # 32 nodes; tile_i=16 -> grid of 2

    k_pos, k_x, k_u, k_p = jax.random.split(key, 4)
    pos = jax.random.uniform(k_pos, (n_nodes, 3), jnp.float32)
    x = jax.random.normal(k_x, (n_nodes, node_features), jnp.float32)
    u = jax.random.normal(k_u, (num_graphs, global_features), jnp.float32)
    batch = jnp.repeat(jnp.arange(num_graphs, dtype=jnp.int32), nodes_per_graph)

    raw_layers, raw_readout = init_model(k_p, node_features, global_features,
                                         n_layers, hidden, latent)
    layer_params = prep_layer_params(raw_layers)
    readout_params = prep_readout_params(raw_readout, latent)

    out = model_gnn_forward(x, pos, batch, u, layer_params, readout_params,
                            r=r, num_graphs=num_graphs, loop=False, tile_i=16)
    out = jax.block_until_ready(out)
    assert out.shape == (num_graphs, 1) and out.dtype == jnp.float32

    ref = jax.block_until_ready(
        reference_forward(x, pos, batch, u, raw_layers, raw_readout,
                          r=r, num_graphs=num_graphs, loop=False))
    assert jnp.allclose(out, ref, atol=1e-3, rtol=1e-3), (out, ref)
    print("KERNEL_OK")
</pallas_src>

<mosaic_0001>
module attributes {stable_mosaic.version = 11 : i64} {
  func.func @_edge_layer_kernel(%arg0: i32, %arg1: memref<16x4xf32, #tpu.memory_space<vmem>>, %arg2: memref<32x4xf32, #tpu.memory_space<vmem>>, %arg3: memref<16x32xf32, #tpu.memory_space<vmem>>, %arg4: memref<16x1xf32, #tpu.memory_space<vmem>>, %arg5: memref<4x32xf32, #tpu.memory_space<vmem>>, %arg6: memref<4x32xf32, #tpu.memory_space<vmem>>, %arg7: memref<1x32xf32, #tpu.memory_space<vmem>>, %arg8: memref<32x32xf32, #tpu.memory_space<vmem>>, %arg9: memref<1x32xf32, #tpu.memory_space<vmem>>, %arg10: memref<32x16xf32, #tpu.memory_space<vmem>>, %arg11: memref<1x16xf32, #tpu.memory_space<vmem>>, %arg12: memref<16x16xf32, #tpu.memory_space<vmem>>) attributes {dimension_semantics = [#tpu.dimension_semantics<parallel>], iteration_bounds = array<i64: 2>, scalar_prefetch = 0 : i64, scratch_operands = 0 : i64, tpu.core_type = #tpu.core_type<tc>, window_params = [{transform_indices = @transform_0, window_bounds = array<i64: 16, 4>}, {pipeline_mode = #tpu.pipeline_mode<synchronous>, transform_indices = @transform_1, window_bounds = array<i64: 32, 4>}, {transform_indices = @transform_2, window_bounds = array<i64: 16, 32>}, {transform_indices = @transform_3, window_bounds = array<i64: 16, 1>}, {pipeline_mode = #tpu.pipeline_mode<synchronous>, transform_indices = @transform_4, window_bounds = array<i64: 4, 32>}, {pipeline_mode = #tpu.pipeline_mode<synchronous>, transform_indices = @transform_5, window_bounds = array<i64: 4, 32>}, {pipeline_mode = #tpu.pipeline_mode<synchronous>, transform_indices = @transform_6, window_bounds = array<i64: 1, 32>}, {pipeline_mode = #tpu.pipeline_mode<synchronous>, transform_indices = @transform_7, window_bounds = array<i64: 32, 32>}, {pipeline_mode = #tpu.pipeline_mode<synchronous>, transform_indices = @transform_8, window_bounds = array<i64: 1, 32>}, {pipeline_mode = #tpu.pipeline_mode<synchronous>, transform_indices = @transform_9, window_bounds = array<i64: 32, 16>}, {pipeline_mode = #tpu.pipeline_mode<synchronous>, transform_indices = @transform_10, window_bounds = array<i64: 1, 16>}, {transform_indices = @transform_11, window_bounds = array<i64: 16, 16>}]} {
    %c0 = arith.constant 0 : index
    %c0_0 = arith.constant 0 : index
    %0 = vector.load %arg1[%c0, %c0_0] : memref<16x4xf32, #tpu.memory_space<vmem>>, vector<16x4xf32>
    %c0_1 = arith.constant 0 : index
    %c0_2 = arith.constant 0 : index
    %1 = vector.load %arg2[%c0_1, %c0_2] : memref<32x4xf32, #tpu.memory_space<vmem>>, vector<32x4xf32>
    %c0_3 = arith.constant 0 : index
    %c0_4 = arith.constant 0 : index
    %2 = vector.load %arg3[%c0_3, %c0_4] : memref<16x32xf32, #tpu.memory_space<vmem>>, vector<16x32xf32>
    %c0_5 = arith.constant 0 : index
    %c0_6 = arith.constant 0 : index
    %3 = vector.load %arg4[%c0_5, %c0_6] : memref<16x1xf32, #tpu.memory_space<vmem>>, vector<16x1xf32>
    %c0_7 = arith.constant 0 : index
    %c0_8 = arith.constant 0 : index
    %4 = vector.load %arg5[%c0_7, %c0_8] : memref<4x32xf32, #tpu.memory_space<vmem>>, vector<4x32xf32>
    %cst = arith.constant dense<0.000000e+00> : vector<16x32xf32>
    %5 = tpu.matmul %0, %4, %cst {dimension_numbers = #tpu.dot_dimension_numbers<[1], [0], [0], [1], [0, 0, 1, 1], [], []>} : vector<16x4xf32>, vector<4x32xf32>, vector<16x32xf32> -> vector<16x32xf32>
    %c0_9 = arith.constant 0 : index
    %c0_10 = arith.constant 0 : index
    %6 = vector.load %arg7[%c0_9, %c0_10] : memref<1x32xf32, #tpu.memory_space<vmem>>, vector<1x32xf32>
    %7 = vector.broadcast %6 : vector<1x32xf32> to vector<16x32xf32>
    %8 = arith.addf %5, %7 : vector<16x32xf32>
    %c0_11 = arith.constant 0 : index
    %c0_12 = arith.constant 0 : index
    %9 = vector.load %arg6[%c0_11, %c0_12] : memref<4x32xf32, #tpu.memory_space<vmem>>, vector<4x32xf32>
    %cst_13 = arith.constant dense<0.000000e+00> : vector<32x32xf32>
    %10 = tpu.matmul %1, %9, %cst_13 {dimension_numbers = #tpu.dot_dimension_numbers<[1], [0], [0], [1], [0, 0, 1, 1], [], []>} : vector<32x4xf32>, vector<4x32xf32>, vector<32x32xf32> -> vector<32x32xf32>
    %11 = vector.shape_cast %8 : vector<16x32xf32> to vector<16x1x32xf32>
    %12 = vector.shape_cast %10 : vector<32x32xf32> to vector<1x32x32xf32>
    %13 = vector.broadcast %11 : vector<16x1x32xf32> to vector<16x32x32xf32>
    %14 = vector.broadcast %12 : vector<1x32x32xf32> to vector<16x32x32xf32>
    %15 = arith.addf %13, %14 : vector<16x32x32xf32>
    %cst_14 = arith.constant 0.000000e+00 : f32
    %16 = vector.broadcast %cst_14 : f32 to vector<16x32x32xf32>
    %17 = arith.maximumf %15, %16 : vector<16x32x32xf32>
    %18 = vector.shape_cast %17 : vector<16x32x32xf32> to vector<512x32xf32>
    %c0_15 = arith.constant 0 : index
    %c0_16 = arith.constant 0 : index
    %19 = vector.load %arg8[%c0_15, %c0_16] : memref<32x32xf32, #tpu.memory_space<vmem>>, vector<32x32xf32>
    %cst_17 = arith.constant dense<0.000000e+00> : vector<512x32xf32>
    %20 = tpu.matmul %18, %19, %cst_17 {dimension_numbers = #tpu.dot_dimension_numbers<[1], [0], [0], [1], [0, 0, 1, 1], [], []>} : vector<512x32xf32>, vector<32x32xf32>, vector<512x32xf32> -> vector<512x32xf32>
    %c0_18 = arith.constant 0 : index
    %c0_19 = arith.constant 0 : index
    %21 = vector.load %arg9[%c0_18, %c0_19] : memref<1x32xf32, #tpu.memory_space<vmem>>, vector<1x32xf32>
    %22 = vector.broadcast %21 : vector<1x32xf32> to vector<512x32xf32>
    %23 = arith.addf %20, %22 : vector<512x32xf32>
    %cst_20 = arith.constant 0.000000e+00 : f32
    %24 = vector.broadcast %cst_20 : f32 to vector<512x32xf32>
    %25 = arith.maximumf %23, %24 : vector<512x32xf32>
    %26 = vector.shape_cast %25 : vector<512x32xf32> to vector<16x32x32xf32>
    %27 = vector.shape_cast %2 : vector<16x32xf32> to vector<16x1x32xf32>
    "tpu.trace_start"() <{level = 10 : i32, message = "tqn,tnh->tqh"}> : () -> ()
    %cst_21 = arith.constant dense<0.000000e+00> : vector<16x1x32xf32>
    %28 = tpu.matmul %27, %26, %cst_21 {dimension_numbers = #tpu.dot_dimension_numbers<[2], [1], [1], [2], [0, 0, 0, 1, 1, 2], [0], [0]>} : vector<16x1x32xf32>, vector<16x32x32xf32>, vector<16x1x32xf32> -> vector<16x1x32xf32>
    "tpu.trace_stop"() : () -> ()
    %29 = vector.shape_cast %28 : vector<16x1x32xf32> to vector<16x32xf32>
    %c0_22 = arith.constant 0 : index
    %c0_23 = arith.constant 0 : index
    %30 = vector.load %arg10[%c0_22, %c0_23] : memref<32x16xf32, #tpu.memory_space<vmem>>, vector<32x16xf32>
    %cst_24 = arith.constant dense<0.000000e+00> : vector<16x16xf32>
    %31 = tpu.matmul %29, %30, %cst_24 {dimension_numbers = #tpu.dot_dimension_numbers<[1], [0], [0], [1], [0, 0, 1, 1], [], []>} : vector<16x32xf32>, vector<32x16xf32>, vector<16x16xf32> -> vector<16x16xf32>
    %c0_25 = arith.constant 0 : index
    %c0_26 = arith.constant 0 : index
    %32 = vector.load %arg11[%c0_25, %c0_26] : memref<1x16xf32, #tpu.memory_space<vmem>>, vector<1x16xf32>
    %33 = vector.broadcast %3 : vector<16x1xf32> to vector<16x16xf32>
    %34 = vector.broadcast %32 : vector<1x16xf32> to vector<16x16xf32>
    %35 = arith.mulf %33, %34 : vector<16x16xf32>
    %36 = arith.addf %31, %35 : vector<16x16xf32>
    %cst_27 = arith.constant 0.000000e+00 : f32
    %37 = vector.broadcast %cst_27 : f32 to vector<16x16xf32>
    %38 = arith.maximumf %36, %37 : vector<16x16xf32>
    %c0_28 = arith.constant 0 : index
    %c0_29 = arith.constant 0 : index
    %39 = vector.load %arg12[%c0_28, %c0_29] : memref<16x16xf32, #tpu.memory_space<vmem>>, vector<16x16xf32>
    tpu.vector_store %arg12[%c0_28, %c0_29], %38 {strides = array<i32>} : memref<16x16xf32, #tpu.memory_space<vmem>>, vector<16x16xf32>,
    return
  }
  func.func @transform_0(%arg0: i32) -> (i32, i32) {
    %c0_i32 = arith.constant 0 : i32
    %c0_i32_0 = arith.constant 0 : i32
    return %arg0, %c0_i32 : i32, i32
  }
  func.func @transform_1(%arg0: i32) -> (i32, i32) {
    %c0_i32 = arith.constant 0 : i32
    %c0_i32_0 = arith.constant 0 : i32
    %c0_i32_1 = arith.constant 0 : i32
    return %c0_i32, %c0_i32_0 : i32, i32
  }
  func.func @transform_2(%arg0: i32) -> (i32, i32) {
    %c0_i32 = arith.constant 0 : i32
    %c0_i32_0 = arith.constant 0 : i32
    return %arg0, %c0_i32 : i32, i32
  }
  func.func @transform_3(%arg0: i32) -> (i32, i32) {
    %c0_i32 = arith.constant 0 : i32
    %c0_i32_0 = arith.constant 0 : i32
    return %arg0, %c0_i32 : i32, i32
  }
  func.func @transform_4(%arg0: i32) -> (i32, i32) {
    %c0_i32 = arith.constant 0 : i32
    %c0_i32_0 = arith.constant 0 : i32
    %c0_i32_1 = arith.constant 0 : i32
    return %c0_i32, %c0_i32_0 : i32, i32
  }
  func.func @transform_5(%arg0: i32) -> (i32, i32) {
    %c0_i32 = arith.constant 0 : i32
    %c0_i32_0 = arith.constant 0 : i32
    %c0_i32_1 = arith.constant 0 : i32
    return %c0_i32, %c0_i32_0 : i32, i32
  }
  func.func @transform_6(%arg0: i32) -> (i32, i32) {
    %c0_i32 = arith.constant 0 : i32
    %c0_i32_0 = arith.constant 0 : i32
    %c0_i32_1 = arith.constant 0 : i32
    return %c0_i32, %c0_i32_0 : i32, i32
  }
  func.func @transform_7(%arg0: i32) -> (i32, i32) {
    %c0_i32 = arith.constant 0 : i32
    %c0_i32_0 = arith.constant 0 : i32
    %c0_i32_1 = arith.constant 0 : i32
    return %c0_i32, %c0_i32_0 : i32, i32
  }
  func.func @transform_8(%arg0: i32) -> (i32, i32) {
    %c0_i32 = arith.constant 0 : i32
    %c0_i32_0 = arith.constant 0 : i32
    %c0_i32_1 = arith.constant 0 : i32
    return %c0_i32, %c0_i32_0 : i32, i32
  }
  func.func @transform_9(%arg0: i32) -> (i32, i32) {
    %c0_i32 = arith.constant 0 : i32
    %c0_i32_0 = arith.constant 0 : i32
    %c0_i32_1 = arith.constant 0 : i32
    return %c0_i32, %c0_i32_0 : i32, i32
  }
  func.func @transform_10(%arg0: i32) -> (i32, i32) {
    %c0_i32 = arith.constant 0 : i32
    %c0_i32_0 = arith.constant 0 : i32
    %c0_i32_1 = arith.constant 0 : i32
    return %c0_i32, %c0_i32_0 : i32, i32
  }
  func.func @transform_11(%arg0: i32) -> (i32, i32) {
    %c0_i32 = arith.constant 0 : i32
    %c0_i32_0 = arith.constant 0 : i32
    return %arg0, %c0_i32 : i32, i32
  }
}

</mosaic_0001>

<bundles_post_ra>
// kernel: tpu_custom_call.1
= control target key start
LH: loop header
LB: loop body
LE: loop exit
PB: predicated region body
PF: predicated region fallthrough
CT: control target
= control target key end

     0   :  { %s1929_s17 = smov 0   ;;  %s2432_s0 = inlined_call_operand.vmem [shape: f32[32,4], index: 0, kind: input, shape index: {}]   ;;  %s2433_s1 = inlined_call_operand.vmem [shape: f32[32,4], index: 1, kind: input, shape index: {}]   ;;  %s2434_s2 = inlined_call_operand.vmem [shape: f32[32,32], index: 2, kind: input, shape index: {}]   ;;  %s2435_s3 = inlined_call_operand.vmem [shape: f32[32,1], index: 3, kind: input, shape index: {}]   ;;  %s2436_s4 = inlined_call_operand.vmem [shape: f32[4,32], index: 4, kind: input, shape index: {}]   ;;  %s2437_s5 = inlined_call_operand.vmem [shape: f32[4,32], index: 5, kind: input, shape index: {}]   ;;  %s2438_s6 = inlined_call_operand.vmem [shape: f32[1,32], index: 6, kind: input, shape index: {}]   ;;  %s2439_s7 = inlined_call_operand.vmem [shape: f32[32,32], index: 7, kind: input, shape index: {}]   ;;  %s2440_s8 = inlined_call_operand.vmem [shape: f32[1,32], index: 8, kind: input, shape index: {}]   ;;  %s2441_s9 = inlined_call_operand.vmem [shape: f32[32,16], index: 9, kind: input, shape index: {}]   ;;  %s2442_s10 = inlined_call_operand.vmem [shape: f32[1,16], index: 10, kind: input, shape index: {}]   ;;  %s2443_s11 = inlined_call_operand.vmem [shape: f32[32,16], index: 11, kind: output, shape index: {}]  }
   0x1 LB: > { %s1729_s18 = sadd.s32 4294967295, %s1866_s17   ;;  %p1733_p0 = scmp.ge.s32.totalorder %s1866_s17, 1  ;;  %s1866_s17 = sphi %s1929_s17, %s21_s17  }
   0x2   : > { %p360_p1 = scmp.lt.s32.totalorder %s1866_s17, 3 }
   0x4   : > { %p361_p2 = pnand %p1733_p0, %p360_p1 }
   0x5   : > { %s1734_s21 = sshll.u32 (!%p361_p2), %s1729_s18, 1 }
   0x6   : > { %364 = sbr.rel (%p361_p2) target bundleno = 756 (0x2f4), region = 64  ;;  %p411_p3 = scmp.lt.s32.totalorder (!%p361_p2), %s1734_s21, 3 }
   0xb   : > { %v444_v0 = vld [vmem:[%s2436_s4] sm:$0xf]  ;;  %vm456_vm0 = vcmask 1043456   ;;  %s2445_s21 = smov (!%p411_p3, %s1734_s21), 3  ;;  %vm449_vm1 = vcmask 31744   ;;  %v437_v5 = vld [vmem:[%s2433_s1 + $0x8] sm:$0xff] }
   0xc   : > { %1834 = vmatpush.msk.msra.mxu1 %vm456_vm0, %v444_v0  ;;  %1742 = vmatpush.msk.msra.mxu0 %vm456_vm0, %v444_v0  ;;  %v483_v1 = vld [vmem:[%s2437_s5] sm:$0xf]  ;;  %s1943_s24 = sshll.u32 %s2445_s21, 3  ;;  %v438_v6 = vld [vmem:[%s2433_s1 + $0x10] sm:$0xff]  ;;  %v439_v7 = vld [vmem:[%s2433_s1 + $0x18] sm:$0xff]  ;;  %vm712_vm2 = vcmask 261120  }
   0xd   : > { %s414_s27 = scalar_lea.vmem %s2432_s0, %s1943_s24  ;;  %v436_v4 = vld [vmem:[%s2433_s1] sm:$0xff]  ;;  %v707_v8 = vld [vmem:[%s2439_s7 + $0x18] sm:$0xff]  ;;  %v706_v9 = vld [vmem:[%s2439_s7 + $0x10] sm:$0xff]  ;;  %s2215_s14 = scalar_lea.vmem %s2434_s2, %s1943_s24  ;;  %vm1583_vm3 = vcmask 1041409   ;;  %vm1586_vm4 = vcmask 1042434   ;;  %vm1589_vm5 = vcmask 1043459  }
   0xe   : > { %1745 = vmatpush.msk.msrb.mxu1 %vm456_vm0, %v483_v1  ;;  %v435_v2 = vld [vmem:[%s414_s27 + $0x8] sm:$0xff]  ;;  %v434_v3 = vld [vmem:[%s414_s27] sm:$0xff]  ;;  %917 = vmatpush.msrb.mxu0 %v707_v8  ;;  %s2393_s20 = scalar_lea.vmem %s2435_s3, %s1943_s24  ;;  %vm1592_vm6 = vcmask 1044484   ;;  %vm1595_vm7 = vcmask 1045509   ;;  %vm1598_vm8 = vcmask 1046534   ;;  %vm1601_vm9 = vcmask 1047559   ;;  %s432_s13 = scalar_lea.vmem %s2443_s11, %s1943_s24 }
   0xf   : > { %1744 = vmatmul.msk.f32.vlgmr.msra.gmra.mxu1 %vm449_vm1, %v435_v2  ;;  %1743 = vmatmul.msk.f32.vlgmr.msra.gmra.mxu0 %vm449_vm1, %v434_v3  ;;  %v705_v10 = vld [vmem:[%s2439_s7 + $0x8] sm:$0xff]  ;;  %v704_v11 = vld [vmem:[%s2439_s7] sm:$0xff]  ;;  %vm1646_vm10 = vcmask 130048  }
  0x10   : > { %1837 = vmatpush.msra.mxu3 %v707_v8  ;;  %1835 = vmatpush.msra.mxu1 %v707_v8  ;;  %v1857_v12 = vld [vmem:[%s2438_s6] ss:$0 sm:$0xff] }
  0x11   : > { %1836 = vmatpush.msra.mxu2 %v707_v8  ;;  %918 = vmatpush.msrb.mxu0 %v706_v9 }
  0x12   : > { %1840 = vmatpush.msra.mxu3 %v706_v9  ;;  %1838 = vmatpush.msra.mxu1 %v706_v9 }
  0x13   : > { %1839 = vmatpush.msra.mxu2 %v706_v9  ;;  %919 = vmatpush.msrb.mxu0 %v705_v10 }
  0x14   : > { %1843 = vmatpush.msra.mxu3 %v705_v10  ;;  %1841 = vmatpush.msra.mxu1 %v705_v10 }
  0x15   : > { %1842 = vmatpush.msra.mxu2 %v705_v10  ;;  %920 = vmatpush.msrb.mxu0 %v704_v11 }
  0x16   : > { %1846 = vmatpush.msra.mxu3 %v704_v11  ;;  %1844 = vmatpush.msra.mxu1 %v704_v11 }
  0x17   : > { %1746 = vmatmul.msk.f32.vlgmr.msrb.gmra.mxu1 %vm449_vm1, %v436_v4  ;;  %1845 = vmatpush.msra.mxu2 %v704_v11 }
  0x1f   : > { %1747 = vmatmul.msk.f32.gmra.mxu1 %vm449_vm1, %v437_v5 }
  0x27   : > { %1748 = vmatmul.msk.f32.gmra.mxu1 %vm449_vm1, %v438_v6 }
  0x2f   : > { %1749 = vmatmul.msk.f32.gmra.mxu1 %vm449_vm1, %v439_v7 }
  0x8c   : > { %v480_v13 = vpop.f32.mrf.mxu1  ;;  %v477_v14 = vpop.f32.mrf.mxu0 }
  0x8d   : > { %v1976_v15 = vadd.f32 %v1857_v12, %v477_v14  ;;  %v1978_v16 = vadd.f32 %v1857_v12, %v480_v13 }
  0x8f   : > { %v544_v17 = vperm.slane %v1976_v15, 0  ;;  %v532_v18 = vrot.slane %v1976_v15, 3  ;;  %v535_v19 = vrot.slane %v1976_v15, 6  ;;  %v537_v24 = vrot.slane %v1978_v16, 1 }
  0x90   : > { %v540_v25 = vrot.slane %v1978_v16, 4  ;;  %v543_v26 = vrot.slane %v1978_v16, 7  ;;  %v538_v27 = vrot.slane %v1978_v16, 2  ;;  %v539_v52 = vrot.slane %v1978_v16, 3 }
  0x91   : > { %v547_v22 = vperm.slane %v532_v18, 0  ;;  %v550_v23 = vperm.slane %v535_v19, 0  ;;  %v1997_v31 = vperm.slane %v537_v24, 0  ;;  %v530_v55 = vrot.slane %v1976_v15, 1 }
  0x92   : > { %v556_v32 = vperm.slane %v540_v25, 0  ;;  %v1999_v33 = vperm.slane %v543_v26, 0  ;;  %v2001_v34 = vperm.slane %v538_v27, 0  ;;  %v533_v56 = vrot.slane %v1976_v15, 4 }
  0x93   : > { %v2054_v58 = vperm.slane %v539_v52, 0  ;;  %v536_v1 = vrot.slane %v1976_v15, 7  ;;  %v545_v6 = vperm.slane %v530_v55, 0  ;;  %v541_v8 = vrot.slane %v1978_v16, 5 }
  0x94   : > { %v1983_v20 = vpop.f32.mrf.mxu1  ;;  %v548_v7 = vperm.slane %v533_v56, 0 }
  0x95   : > { %v576_v21 = vadd.f32 %v544_v17, %v1983_v20  ;;  %v1992_v29 = vadd.f32 %v547_v22, %v1983_v20  ;;  %v1995_v30 = vadd.f32 %v550_v23, %v1983_v20  ;;  %v2005_v35 = vadd.f32 %v1997_v31, %v1983_v20 }
  0x96   : > { %v2011_v37 = vadd.f32 %v1999_v33, %v1983_v20  ;;  %v2015_v38 = vadd.f32 %v2001_v34, %v1983_v20  ;;  %v2018_v39 = vadd.f32 %v556_v32, %v1983_v20  ;;  %v2073_v63 = vadd.f32 %v2054_v58, %v1983_v20 }
  0x97   : > { %v640_v28 = vmax.f32 %v576_v21, 0.0  ;;  %v551_v13 = vperm.slane %v536_v1, 0  ;;  %v557_v14 = vperm.slane %v541_v8, 0  ;;  %v592_v18 = vadd.f32 %v548_v7, %v1983_v20 }
  0x98   : > { %v531_v8 = vrot.slane %v1976_v15, 2 }
  0x99   : > { %1750 = vmatmul.msk.f32.vlgmr.msrb.gmra.mxu0 %vm712_vm2, %v640_v28  ;;  %v604_v19 = vadd.f32 %v551_v13, %v1983_v20  ;;  %v628_v21 = vadd.f32 %v557_v14, %v1983_v20  ;;  %v656_v25 = vmax.f32 %v592_v18, 0.0 }
  0x9b   : > { %v668_v26 = vmax.f32 %v604_v19, 0.0  ;;  %v692_v27 = vmax.f32 %v628_v21, 0.0  ;;  %v546_v19 = vperm.slane %v531_v8, 0 }
  0x9c   : > { %v2007_v36 = vpop.f32.mrf.mxu1 }
  0x9d   : > { %v577_v40 = vadd.f32 %v544_v17, %v2007_v36  ;;  %v625_v41 = vadd.f32 %v556_v32, %v2007_v36  ;;  %v2025_v44 = vadd.f32 %v547_v22, %v2007_v36  ;;  %v2028_v45 = vadd.f32 %v550_v23, %v2007_v36 }
  0x9e   : > { %v2032_v46 = vadd.f32 %v1997_v31, %v2007_v36  ;;  %v2036_v47 = vadd.f32 %v1999_v33, %v2007_v36  ;;  %v2040_v48 = vadd.f32 %v2001_v34, %v2007_v36  ;;  %v581_v28 = vadd.f32 %v545_v6, %v2007_v36 }
  0x9f   : > { %v641_v42 = vmax.f32 %v577_v40, 0.0  ;;  %v689_v43 = vmax.f32 %v625_v41, 0.0  ;;  %v605_v40 = vadd.f32 %v551_v13, %v2007_v36  ;;  %v629_v41 = vadd.f32 %v557_v14, %v2007_v36 }
  0xa1   : > { %1751 = vmatmul.msk.f32.gmra.mxu0 %vm712_vm2, %v641_v42  ;;  %1799 = vmatmul.msk.f32.vlgmr.msra.gmra.mxu3 %vm712_vm2, %v689_v43  ;;  %v645_v42 = vmax.f32 %v581_v28, 0.0 }
  0xa4   : > { %v2042_v49 = vpop.f32.mrf.mxu1 }
  0xa5   : > { %v578_v50 = vadd.f32 %v544_v17, %v2042_v49  ;;  %v626_v51 = vadd.f32 %v556_v32, %v2042_v49  ;;  %v2052_v57 = vadd.f32 %v547_v22, %v2042_v49  ;;  %v2057_v59 = vadd.f32 %v550_v23, %v2042_v49 }
  0xa6   : > { %v2061_v60 = vadd.f32 %v1997_v31, %v2042_v49  ;;  %v2065_v61 = vadd.f32 %v1999_v33, %v2042_v49  ;;  %v2069_v62 = vadd.f32 %v2001_v34, %v2042_v49  ;;  %v582_v52 = vadd.f32 %v545_v6, %v2042_v49 }
  0xa7   : > { %v642_v53 = vmax.f32 %v578_v50, 0.0  ;;  %v690_v54 = vmax.f32 %v626_v51, 0.0  ;;  %v669_v50 = vmax.f32 %v605_v40, 0.0  ;;  %v693_v51 = vmax.f32 %v629_v41, 0.0 }
  0xa8   : > { %v630_v55 = vadd.f32 %v557_v14, %v2042_v49  ;;  %v646_v56 = vmax.f32 %v582_v52, 0.0 }
  0xa9   : > { %1752 = vmatmul.msk.f32.gmra.mxu0 %vm712_vm2, %v642_v53  ;;  %1800 = vmatmul.msk.f32.gmra.mxu3 %vm712_vm2, %v690_v54  ;;  %v594_v53 = vadd.f32 %v548_v7, %v2042_v49  ;;  %v606_v54 = vadd.f32 %v551_v13, %v2042_v49 }
  0xab   : > { %v658_v1 = vmax.f32 %v594_v53, 0.0  ;;  %v586_v53 = vadd.f32 %v546_v19, %v2042_v49 }
  0xac   : > { %v2075_v0 = vpop.f32.mrf.mxu1 }
  0xad   : > { %v579_v2 = vadd.f32 %v544_v17, %v2075_v0  ;;  %v591_v3 = vadd.f32 %v547_v22, %v2075_v0  ;;  %v603_v4 = vadd.f32 %v550_v23, %v2075_v0  ;;  %v627_v5 = vadd.f32 %v556_v32, %v2075_v0 }
  0xae   : > { %v580_v17 = vadd.f32 %v545_v6, %v1983_v20  ;;  %v2093_v22 = vadd.f32 %v2054_v58, %v2007_v36  ;;  %v2097_v23 = vadd.f32 %v2054_v58, %v2042_v49  ;;  %v593_v32 = vadd.f32 %v548_v7, %v2007_v36 }
  0xaf   : > { %v643_v9 = vmax.f32 %v579_v2, 0.0  ;;  %v655_v10 = vmax.f32 %v591_v3, 0.0  ;;  %v667_v11 = vmax.f32 %v603_v4, 0.0  ;;  %v691_v12 = vmax.f32 %v627_v5, 0.0 }
  0xb0   : > { %v644_v24 = vmax.f32 %v580_v17, 0.0  ;;  %v657_v43 = vmax.f32 %v593_v32, 0.0  ;;  %v670_v2 = vmax.f32 %v606_v54, 0.0  ;;  %v694_v3 = vmax.f32 %v630_v55, 0.0 }
  0xb1   : > { %1753 = vmatmul.msk.f32.gmra.mxu0 %vm712_vm2, %v643_v9  ;;  %1765 = vmatmul.msk.f32.vlgmr.msra.gmra.mxu1 %vm712_vm2, %v655_v10  ;;  %v583_v4 = vadd.f32 %v545_v6, %v2075_v0  ;;  %v595_v5 = vadd.f32 %v548_v7, %v2075_v0  ;;  %v534_v9 = vrot.slane %v1976_v15, 5  ;;  %v607_v10 = vadd.f32 %v551_v13, %v2075_v0 }
  0xb2   : > { %1777 = vmatmul.msk.f32.vlgmr.msra.gmra.mxu2 %vm712_vm2, %v667_v11  ;;  %1801 = vmatmul.msk.f32.gmra.mxu3 %vm712_vm2, %v691_v12  ;;  %v631_v11 = vadd.f32 %v557_v14, %v2075_v0  ;;  %v542_v12 = vrot.slane %v1978_v16, 6  ;;  %v552_v15 = vperm.slane %v1978_v16, 0  ;;  %v584_v7 = vadd.f32 %v546_v19, %v1983_v20 }
  0xb3   : > { %v647_v17 = vmax.f32 %v583_v4, 0.0  ;;  %v659_v18 = vmax.f32 %v595_v5, 0.0  ;;  %v549_v21 = vperm.slane %v534_v9, 0  ;;  %v585_v16 = vadd.f32 %v546_v19, %v2007_v36 }
  0xb4   : > { %v558_v6 = vperm.slane %v542_v12, 0  ;;  %v608_v14 = vadd.f32 %v552_v15, %v1983_v20  ;;  %v610_v55 = vadd.f32 %v552_v15, %v2042_v49  ;;  %v587_v4 = vadd.f32 %v546_v19, %v2075_v0 }
  0xb5   : > { %v596_v13 = vadd.f32 %v549_v21, %v1983_v20  ;;  %v597_v41 = vadd.f32 %v549_v21, %v2007_v36  ;;  %v598_v54 = vadd.f32 %v549_v21, %v2042_v49  ;;  %v599_v5 = vadd.f32 %v549_v21, %v2075_v0 }
  0xb6   : > { %v672_v32 = vmax.f32 %v608_v14, 0.0  ;;  %v611_v8 = vadd.f32 %v552_v15, %v2075_v0  ;;  %v651_v9 = vmax.f32 %v587_v4, 0.0  ;;  %v676_v19 = vmax.f32 %v2005_v35, 0.0 }
  0xb7   : > { %v660_v28 = vmax.f32 %v596_v13, 0.0  ;;  %v700_v21 = vmax.f32 %v2011_v37, 0.0  ;;  %v654_v35 = vmax.f32 %v2052_v57, 0.0  ;;  %v666_v37 = vmax.f32 %v2057_v59, 0.0 }
  0xb9   : > { %1754 = vmatmul.msk.f32.gmra.mxu0 %vm712_vm2, %v644_v24  ;;  %1766 = vmatmul.msk.f32.gmra.mxu1 %vm712_vm2, %v656_v25  ;;  %v671_v24 = vmax.f32 %v607_v10, 0.0  ;;  %v695_v25 = vmax.f32 %v631_v11, 0.0  ;;  %v663_v10 = vmax.f32 %v599_v5, 0.0  ;;  %v675_v11 = vmax.f32 %v611_v8, 0.0 }
  0xba   : > { %1778 = vmatmul.msk.f32.gmra.mxu2 %vm712_vm2, %v668_v26  ;;  %1802 = vmatmul.msk.f32.gmra.mxu3 %vm712_vm2, %v692_v27  ;;  %v632_v26 = vadd.f32 %v558_v6, %v1983_v20  ;;  %v648_v27 = vmax.f32 %v584_v7, 0.0  ;;  %v633_v20 = vadd.f32 %v558_v6, %v2007_v36  ;;  %v619_v7 = vadd.f32 %v2001_v34, %v2075_v0 }
  0xbc   : > { %v696_v40 = vmax.f32 %v632_v26, 0.0  ;;  %v697_v52 = vmax.f32 %v633_v20, 0.0  ;;  %v2222_v20 = vld [vmem:[%s2215_s14] sm:$0xff] }
  0xc1   : > { %1755 = vmatmul.msk.f32.gmra.mxu0 %vm712_vm2, %v645_v42  ;;  %1767 = vmatmul.msk.f32.gmra.mxu1 %vm712_vm2, %v657_v43  ;;  %v609_v42 = vadd.f32 %v552_v15, %v2007_v36  ;;  %v649_v43 = vmax.f32 %v585_v16, 0.0  ;;  %v634_v36 = vadd.f32 %v558_v6, %v2042_v49  ;;  %v635_v49 = vadd.f32 %v558_v6, %v2075_v0 }
  0xc2   : > { %1779 = vmatmul.msk.f32.gmra.mxu2 %vm712_vm2, %v669_v50  ;;  %1803 = vmatmul.msk.f32.gmra.mxu3 %vm712_vm2, %v693_v51  ;;  %v661_v50 = vmax.f32 %v597_v41, 0.0  ;;  %v681_v6 = vmax.f32 %v2040_v48, 0.0 }
  0xc3   : > { %v673_v51 = vmax.f32 %v609_v42, 0.0  ;;  %v699_v12 = vmax.f32 %v635_v49, 0.0 }
  0xc9   : > { %1756 = vmatmul.msk.f32.gmra.mxu0 %vm712_vm2, %v646_v56  ;;  %1768 = vmatmul.msk.f32.gmra.mxu1 %vm712_vm2, %v658_v1  ;;  %v650_v56 = vmax.f32 %v586_v53, 0.0  ;;  %v662_v1 = vmax.f32 %v598_v54, 0.0  ;;  %v685_v54 = vmax.f32 %v2093_v22, 0.0 }
  0xca   : > { %1780 = vmatmul.msk.f32.gmra.mxu2 %vm712_vm2, %v670_v2  ;;  %1804 = vmatmul.msk.f32.gmra.mxu3 %vm712_vm2, %v694_v3  ;;  %v674_v2 = vmax.f32 %v610_v55, 0.0  ;;  %v698_v3 = vmax.f32 %v634_v36, 0.0 }
  0xd1   : > { %1757 = vmatmul.msk.f32.gmra.mxu0 %vm712_vm2, %v647_v17  ;;  %1769 = vmatmul.msk.f32.gmra.mxu1 %vm712_vm2, %v659_v18  ;;  %v652_v17 = vmax.f32 %v1992_v29, 0.0  ;;  %v664_v18 = vmax.f32 %v1995_v30, 0.0  ;;  %v677_v29 = vmax.f32 %v2032_v46, 0.0  ;;  %v701_v30 = vmax.f32 %v2036_v47, 0.0 }
  0xd2   : > { %1781 = vmatmul.msk.f32.gmra.mxu2 %vm712_vm2, %v671_v24  ;;  %1805 = vmatmul.msk.f32.gmra.mxu3 %vm712_vm2, %v695_v25  ;;  %v653_v24 = vmax.f32 %v2025_v44, 0.0  ;;  %v665_v25 = vmax.f32 %v2028_v45, 0.0  ;;  %v678_v44 = vmax.f32 %v2061_v60, 0.0  ;;  %v702_v45 = vmax.f32 %v2065_v61, 0.0 }
  0xd3   : > { %v615_v46 = vadd.f32 %v1997_v31, %v2075_v0  ;;  %v639_v47 = vadd.f32 %v1999_v33, %v2075_v0  ;;  %v680_v61 = vmax.f32 %v2015_v38, 0.0  ;;  %v682_v33 = vmax.f32 %v2069_v62, 0.0  ;;  %v2204_v38 = vld [vmem:[%s2440_s8] ss:$0 sm:$0xff] }
  0xd5   : > { %v679_v57 = vmax.f32 %v615_v46, 0.0  ;;  %v703_v59 = vmax.f32 %v639_v47, 0.0 }
  0xd9   : > { %1758 = vmatmul.msk.f32.gmra.mxu0 %vm712_vm2, %v648_v27  ;;  %1770 = vmatmul.msk.f32.gmra.mxu1 %vm712_vm2, %v660_v28  ;;  %v683_v27 = vmax.f32 %v619_v7, 0.0 }
  0xda   : > { %1782 = vmatmul.msk.f32.gmra.mxu2 %vm712_vm2, %v672_v32  ;;  %1806 = vmatmul.msk.f32.gmra.mxu3 %vm712_vm2, %v696_v40 }
  0xe1   : > { %1759 = vmatmul.msk.f32.gmra.mxu0 %vm712_vm2, %v649_v43  ;;  %1771 = vmatmul.msk.f32.gmra.mxu1 %vm712_vm2, %v661_v50  ;;  %v684_v50 = vmax.f32 %v2073_v63, 0.0  ;;  %v686_v63 = vmax.f32 %v2097_v23, 0.0 }
  0xe2   : > { %1783 = vmatmul.msk.f32.gmra.mxu2 %vm712_vm2, %v673_v51  ;;  %1807 = vmatmul.msk.f32.gmra.mxu3 %vm712_vm2, %v697_v52 }
  0xe9   : > { %1760 = vmatmul.msk.f32.gmra.mxu0 %vm712_vm2, %v650_v56  ;;  %1772 = vmatmul.msk.f32.gmra.mxu1 %vm712_vm2, %v662_v1  ;;  %v623_v1 = vadd.f32 %v2054_v58, %v2075_v0 }
  0xea   : > { %1784 = vmatmul.msk.f32.gmra.mxu2 %vm712_vm2, %v674_v2  ;;  %1808 = vmatmul.msk.f32.gmra.mxu3 %vm712_vm2, %v698_v3 }
  0xeb   : > { %v687_v49 = vmax.f32 %v623_v1, 0.0 }
  0xf1   : > { %1761 = vmatmul.msk.f32.gmra.mxu0 %vm712_vm2, %v651_v9  ;;  %1773 = vmatmul.msk.f32.gmra.mxu1 %vm712_vm2, %v663_v10 }
  0xf2   : > { %1785 = vmatmul.msk.f32.gmra.mxu2 %vm712_vm2, %v675_v11  ;;  %1809 = vmatmul.msk.f32.gmra.mxu3 %vm712_vm2, %v699_v12 }
  0xf9   : > { %1762 = vmatmul.msk.f32.gmra.mxu0 %vm712_vm2, %v652_v17  ;;  %1774 = vmatmul.msk.f32.gmra.mxu1 %vm712_vm2, %v664_v18 }
  0xfa   : > { %1786 = vmatmul.msk.f32.gmra.mxu2 %vm712_vm2, %v676_v19  ;;  %1810 = vmatmul.msk.f32.gmra.mxu3 %vm712_vm2, %v700_v21 }
 0x101   : > { %1763 = vmatmul.msk.f32.gmra.mxu0 %vm712_vm2, %v653_v24  ;;  %1775 = vmatmul.msk.f32.gmra.mxu1 %vm712_vm2, %v665_v25 }
 0x102   : > { %1787 = vmatmul.msk.f32.gmra.mxu2 %vm712_vm2, %v677_v29  ;;  %1811 = vmatmul.msk.f32.gmra.mxu3 %vm712_vm2, %v701_v30 }
 0x109   : > { %1764 = vmatmul.msk.f32.gmra.mxu0 %vm712_vm2, %v654_v35  ;;  %1776 = vmatmul.msk.f32.gmra.mxu1 %vm712_vm2, %v666_v37  ;;  %v688_v35 = vmax.f32 %v2018_v39, 0.0 }
 0x10a   : > { %1788 = vmatmul.msk.f32.gmra.mxu2 %vm712_vm2, %v678_v44  ;;  %1812 = vmatmul.msk.f32.gmra.mxu3 %vm712_vm2, %v702_v45 }
 0x112   : > { %1789 = vmatmul.msk.f32.gmra.mxu2 %vm712_vm2, %v679_v57  ;;  %1813 = vmatmul.msk.f32.gmra.mxu3 %vm712_vm2, %v703_v59 }
 0x116   : > { %v922_v60 = vpop.f32.mrf.mxu0 }
 0x117   : > { %v923_v32 = vadd.f32 %v2204_v38, %v922_v60 }
 0x119   : > { %v1114_v43 = vmax.f32 %v923_v32, 0.0 }
 0x11a   : > { %1790 = vmatmul.msk.f32.gmra.mxu2 %vm712_vm2, %v680_v61 }
 0x11e   : > { %v925_v15 = vpop.f32.mrf.mxu0 }
 0x11f   : > { %v926_v28 = vadd.f32 %v2204_v38, %v925_v15 }
 0x121   : > { %v1115_v40 = vmax.f32 %v926_v28, 0.0 }
 0x122   : > { %1791 = vmatmul.msk.f32.gmra.mxu2 %vm712_vm2, %v681_v6 }
 0x124   : > { %v2238_v2 = vpop.f32.mrf.mxu3 }
 0x126   : > { %v928_v31 = vpop.f32.mrf.mxu0 }
 0x127   : > { %v929_v48 = vadd.f32 %v2204_v38, %v928_v31 }
 0x129   : > { %v1116_v34 = vmax.f32 %v929_v48, 0.0 }
 0x12a   : > { %1792 = vmatmul.msk.f32.gmra.mxu2 %vm712_vm2, %v682_v33 }
 0x12c   : > { %v2250_v24 = vpop.f32.mrf.mxu3 }
 0x12e   : > { %v931_v13 = vpop.f32.mrf.mxu0  ;;  %v967_v14 = vpop.f32.mrf.mxu1 }
 0x12f   : > { %v932_v26 = vadd.f32 %v2204_v38, %v931_v13  ;;  %v968_v58 = vadd.f32 %v2204_v38, %v967_v14 }
 0x131   : > { %v1117_v62 = vmax.f32 %v932_v26, 0.0  ;;  %v1129_v37 = vmax.f32 %v968_v58, 0.0  ;;  %v1180_v26 = vrot.slane %v2222_v20, 1 }
 0x132   : > { %1793 = vmatmul.msk.f32.gmra.mxu2 %vm712_vm2, %v683_v27 }
 0x133   : > { %1208 = vmatpush.msrb.mxu3 %v1117_v62 }
 0x135   : > { %v2217_v16 = vpop.f32.mrf.mxu2  ;;  %1209 = vmatpush.msrb.mxu3 %v1116_v34  ;;  %v2260_v39 = vpop.f32.mrf.mxu3 }
 0x136   : > { %v934_v41 = vpop.f32.mrf.mxu0  ;;  %v2219_v42 = vpop.f32.mrf.mxu1 }
 0x137   : > { %1210 = vmatpush.msrb.mxu3 %v1115_v40  ;;  %v935_v23 = vadd.f32 %v2204_v38, %v934_v41  ;;  %v971_v1 = vadd.f32 %v2204_v38, %v2219_v42 }
 0x139   : > { %1211 = vmatpush.msrb.mxu3 %v1114_v43  ;;  %v1118_v25 = vmax.f32 %v935_v23, 0.0 }
 0x13a   : > { %1794 = vmatmul.msk.f32.gmra.mxu2 %vm712_vm2, %v684_v50  ;;  %1814 = vmatmul.msk.f32.vlgmr.msrb.gmra.mxu3 %vm712_vm2, %v2222_v20 }
 0x13d   : > { %v1006_v51 = vpop.f32.mrf.mxu2  ;;  %v2266_v31 = vpop.f32.mrf.mxu3 }
 0x13e   : > { %v937_v52 = vpop.f32.mrf.mxu0  ;;  %v2228_v53 = vpop.f32.mrf.mxu1  ;;  %v1007_v44 = vadd.f32 %v2204_v38, %v1006_v51 }
 0x13f   : > { %v938_v9 = vadd.f32 %v2204_v38, %v937_v52 }
 0x140   : > { %v1142_v57 = vmax.f32 %v1007_v44, 0.0 }
 0x141   : > { %v1119_v0 = vmax.f32 %v938_v9, 0.0  ;;  %v1183_v9 = vrot.slane %v2222_v20, 4 }
 0x142   : > { %1795 = vmatmul.msk.f32.gmra.mxu2 %vm712_vm2, %v685_v54 }
 0x145   : > { %v1009_v55 = vpop.f32.mrf.mxu2  ;;  %v2277_v40 = vpop.f32.mrf.mxu3 }
 0x146   : > { %v940_v36 = vpop.f32.mrf.mxu0  ;;  %v2232_v56 = vpop.f32.mrf.mxu1  ;;  %v1010_v29 = vadd.f32 %v2204_v38, %v1009_v55  ;;  %v1181_v55 = vrot.slane %v2222_v20, 2 }
 0x147   : > { %v941_v22 = vadd.f32 %v2204_v38, %v940_v36  ;;  %v977_v50 = vadd.f32 %v2204_v38, %v2232_v56  ;;  %v974_v36 = vadd.f32 %v2204_v38, %v2228_v53 }
 0x148   : > { %v1143_v46 = vmax.f32 %v1010_v29, 0.0 }
 0x149   : > { %v1120_v11 = vmax.f32 %v941_v22, 0.0  ;;  %v1131_v56 = vmax.f32 %v974_v36, 0.0  ;;  %v1130_v22 = vmax.f32 %v971_v1, 0.0 }
 0x14a   : > { %1796 = vmatmul.msk.f32.gmra.mxu2 %vm712_vm2, %v686_v63 }
 0x14d   : > { %v1012_v3 = vpop.f32.mrf.mxu2 }
 0x14e   : > { %v943_v4 = vpop.f32.mrf.mxu0  ;;  %v979_v5 = vpop.f32.mrf.mxu1  ;;  %v1013_v17 = vadd.f32 %v2204_v38, %v1012_v3  ;;  %v1132_v3 = vmax.f32 %v977_v50, 0.0 }
 0x14f   : > { %v944_v8 = vadd.f32 %v2204_v38, %v943_v4  ;;  %v980_v34 = vadd.f32 %v2204_v38, %v979_v5  ;;  %v1004_v4 = vadd.f32 %v2204_v38, %v2217_v16 }
 0x150   : > { %v1144_v45 = vmax.f32 %v1013_v17, 0.0 }
 0x151   : > { %v1121_v10 = vmax.f32 %v944_v8, 0.0  ;;  %v1133_v63 = vmax.f32 %v980_v34, 0.0  ;;  %v1141_v53 = vmax.f32 %v1004_v4, 0.0 }
 0x152   : > { %1797 = vmatmul.msk.f32.gmra.mxu2 %vm712_vm2, %v687_v49 }
 0x153   : > { %1230 = vmatpush.msra.mxu3 %v1121_v10  ;;  %v2292_v10 = vpop.f32.mrf.mxu3 }
 0x155   : > { %v1015_v12 = vpop.f32.mrf.mxu2  ;;  %1231 = vmatpush.msra.mxu3 %v1120_v11 }
 0x156   : > { %v1016_v18 = vadd.f32 %v2204_v38, %v1015_v12  ;;  %v946_v19 = vpop.f32.mrf.mxu0  ;;  %v2248_v21 = vpop.f32.mrf.mxu1 }
 0x157   : > { %1232 = vmatpush.msra.mxu3 %v1119_v0  ;;  %v947_v62 = vadd.f32 %v2204_v38, %v946_v19 }
 0x158   : > { %v1145_v30 = vmax.f32 %v1016_v18, 0.0 }
 0x159   : > { %1233 = vmatpush.msra.mxu3 %v1118_v25  ;;  %v1122_v54 = vmax.f32 %v947_v62, 0.0 }
 0x15a   : > { %1798 = vmatmul.msk.f32.gmra.mxu2 %vm712_vm2, %v688_v35  ;;  %1362 = vmatpush.msrb.mxu1 %v1145_v30 }
 0x15b   : > { %1274 = vmatpush.msrb.mxu3 %v1129_v37  ;;  %v2301_v29 = vpop.f32.mrf.mxu3 }
 0x15c   : > { %1363 = vmatpush.msrb.mxu1 %v1144_v45  ;;  %1815 = vmatmul.msk.f32.vlgmr.msra.gmra.mxu3 %vm712_vm2, %v1180_v26  ;;  %v1185_v45 = vrot.slane %v2222_v20, 6 }
 0x15d   : > { %v2256_v47 = vpop.f32.mrf.mxu2 }
 0x15e   : > { %1364 = vmatpush.msrb.mxu1 %v1143_v46  ;;  %v949_v59 = vpop.f32.mrf.mxu0  ;;  %v2258_v60 = vpop.f32.mrf.mxu1 }
 0x15f   : > { %v950_v27 = vadd.f32 %v2204_v38, %v949_v59 }
 0x160   : > { %1365 = vmatpush.msrb.mxu1 %v1142_v57 }
 0x161   : > { %v1123_v41 = vmax.f32 %v950_v27, 0.0 }
 0x165   : > { %v2262_v61 = vpop.f32.mrf.mxu2 }
 0x166   : > { %v952_v15 = vpop.f32.mrf.mxu0  ;;  %v2264_v6 = vpop.f32.mrf.mxu1 }
 0x167   : > { %v953_v14 = vadd.f32 %v2204_v38, %v952_v15  ;;  %v989_v44 = vadd.f32 %v2204_v38, %v2264_v6  ;;  %v1182_v15 = vrot.slane %v2222_v20, 3 }
 0x169   : > { %v1124_v32 = vmax.f32 %v953_v14, 0.0  ;;  %v983_v14 = vadd.f32 %v2204_v38, %v2248_v21  ;;  %v1022_v21 = vadd.f32 %v2204_v38, %v2262_v61 }
 0x16d   : > { %v2268_v33 = vpop.f32.mrf.mxu2 }
 0x16e   : > { %v955_v7 = vpop.f32.mrf.mxu0  ;;  %v991_v13 = vpop.f32.mrf.mxu1  ;;  %v1025_v27 = vadd.f32 %v2204_v38, %v2268_v33 }
 0x16f   : > { %v956_v48 = vadd.f32 %v2204_v38, %v955_v7  ;;  %v992_v30 = vadd.f32 %v2204_v38, %v991_v13  ;;  %v986_v7 = vadd.f32 %v2204_v38, %v2258_v60  ;;  %v1134_v60 = vmax.f32 %v983_v14, 0.0 }
 0x170   : > { %v1148_v50 = vmax.f32 %v1025_v27, 0.0 }
 0x171   : > { %v1125_v28 = vmax.f32 %v956_v48, 0.0  ;;  %v1137_v13 = vmax.f32 %v992_v30, 0.0  ;;  %v1136_v48 = vmax.f32 %v989_v44, 0.0  ;;  %v1135_v26 = vmax.f32 %v986_v7, 0.0 }
 0x173   : > { %1252 = vmatpush.msra.mxu0 %v1125_v28  ;;  %v2317_v28 = vpop.f32.mrf.mxu3 }
 0x175   : > { %v1027_v43 = vpop.f32.mrf.mxu2  ;;  %1253 = vmatpush.msra.mxu0 %v1124_v32 }
 0x176   : > { %v958_v51 = vpop.f32.mrf.mxu0  ;;  %v994_v52 = vpop.f32.mrf.mxu1  ;;  %v1028_v6 = vadd.f32 %v2204_v38, %v1027_v43  ;;  %v1019_v43 = vadd.f32 %v2204_v38, %v2256_v47  ;;  %v1073_v47 = vadd.f32 %v2204_v38, %v2250_v24 }
 0x177   : > { %1254 = vmatpush.msra.mxu0 %v1123_v41  ;;  %v959_v17 = vadd.f32 %v2204_v38, %v958_v51  ;;  %v995_v18 = vadd.f32 %v2204_v38, %v994_v52  ;;  %v1147_v52 = vmax.f32 %v1022_v21, 0.0 }
 0x178   : > { %v1149_v62 = vmax.f32 %v1028_v6, 0.0  ;;  %v1146_v36 = vmax.f32 %v1019_v43, 0.0 }
 0x179   : > { %1255 = vmatpush.msra.mxu0 %v1122_v54  ;;  %v1126_v46 = vmax.f32 %v959_v17, 0.0  ;;  %v1138_v57 = vmax.f32 %v995_v18, 0.0  ;;  %v1088_v18 = vadd.f32 %v2204_v38, %v2301_v29  ;;  %v1079_v29 = vadd.f32 %v2204_v38, %v2266_v31 }
 0x17a   : > { %1816 = vmatmul.msk.f32.vlgmr.msra.gmra.mxu0 %vm712_vm2, %v1181_v55  ;;  %v1076_v55 = vadd.f32 %v2204_v38, %v2260_v39  ;;  %v1186_v39 = vrot.slane %v2222_v20, 7 }
 0x17b   : > { %1296 = vmatpush.msrb.mxu0 %v1133_v63  ;;  %v1169_v44 = vmax.f32 %v1088_v18, 0.0 }
 0x17c   : > { %1821 = vmatmul.msk.f32.vlgmr.msrb.gmra.mxu1 %vm712_vm2, %v1186_v39 }
 0x17d   : > { %1297 = vmatpush.msrb.mxu0 %v1132_v3  ;;  %v2289_v5 = vpop.f32.mrf.mxu2  ;;  %v2332_v3 = vpop.f32.mrf.mxu3 }
 0x17e   : > { %v961_v8 = vpop.f32.mrf.mxu0  ;;  %v997_v49 = vpop.f32.mrf.mxu1  ;;  %v1031_v61 = vadd.f32 %v2204_v38, %v2289_v5  ;;  %v1165_v5 = vmax.f32 %v1076_v55, 0.0 }
 0x17f   : > { %1298 = vmatpush.msrb.mxu0 %v1131_v56  ;;  %v962_v11 = vadd.f32 %v2204_v38, %v961_v8  ;;  %v998_v58 = vadd.f32 %v2204_v38, %v997_v49  ;;  %v1070_v56 = vadd.f32 %v2204_v38, %v2238_v2 }
 0x180   : > { %v1150_v4 = vmax.f32 %v1031_v61, 0.0  ;;  %v1094_v61 = vadd.f32 %v2204_v38, %v2332_v3 }
 0x181   : > { %1299 = vmatpush.msrb.mxu0 %v1130_v22  ;;  %v1127_v35 = vmax.f32 %v962_v11, 0.0  ;;  %v1139_v37 = vmax.f32 %v998_v58, 0.0  ;;  %v1164_v22 = vmax.f32 %v1073_v47, 0.0  ;;  %v1163_v8 = vmax.f32 %v1070_v56, 0.0 }
 0x182   : > { %1818 = vmatmul.msk.f32.vlgmr.msrb.gmra.mxu0 %vm712_vm2, %v1183_v9  ;;  %v1091_v47 = vadd.f32 %v2204_v38, %v2317_v28 }
 0x183   : > { %1340 = vmatpush.msra.mxu0 %v1141_v53 }
 0x185   : > { %v1033_v16 = vpop.f32.mrf.mxu2  ;;  %v1096_v49 = vpop.f32.mrf.mxu3 }
 0x186   : > { %v964_v42 = vpop.f32.mrf.mxu0  ;;  %v1000_v23 = vpop.f32.mrf.mxu1  ;;  %v1034_v33 = vadd.f32 %v2204_v38, %v1033_v16  ;;  %v1184_v16 = vrot.slane %v2222_v20, 5 }
 0x187   : > { %v965_v0 = vadd.f32 %v2204_v38, %v964_v42  ;;  %v1001_v12 = vadd.f32 %v2204_v38, %v1000_v23 }
 0x188   : > { %v1151_v63 = vmax.f32 %v1034_v33, 0.0 }
 0x189   : > { %v1128_v19 = vmax.f32 %v965_v0, 0.0  ;;  %v1140_v25 = vmax.f32 %v1001_v12, 0.0  ;;  %v2344_v0 = vld [vmem:[%s2215_s14 + $0x8] sm:$0xff] }
 0x18a   : > { %v1191_v31 = vrot.slane %v2344_v0, 5  ;;  %v1192_v28 = vrot.slane %v2344_v0, 6 }
 0x18b   : > { %1275 = vmatpush.msrb.mxu3 %v1128_v19  ;;  %1341 = vmatpush.msra.mxu0 %v1140_v25  ;;  %v1085_v25 = vadd.f32 %v2204_v38, %v2292_v10  ;;  %v1166_v10 = vmax.f32 %v1079_v29, 0.0 }
 0x18d   : > { %v1036_v59 = vpop.f32.mrf.mxu2  ;;  %1276 = vmatpush.msrb.mxu3 %v1127_v35  ;;  %1342 = vmatpush.msra.mxu0 %v1139_v37  ;;  %v1099_v9 = vpop.f32.mrf.mxu3  ;;  %v1082_v37 = vadd.f32 %v2204_v38, %v2277_v40  ;;  %v1188_v40 = vrot.slane %v2344_v0, 2 }
 0x18e   : > { %v1037_v34 = vadd.f32 %v2204_v38, %v1036_v59 }
 0x18f   : > { %1277 = vmatpush.msrb.mxu3 %v1126_v46  ;;  %1343 = vmatpush.msra.mxu0 %v1138_v57  ;;  %v1187_v46 = vrot.slane %v2344_v0, 1  ;;  %v1167_v57 = vmax.f32 %v1082_v37, 0.0 }
 0x190   : > { %1820 = vmatmul.msk.f32.vlgmr.msra.gmra.mxu0 %vm712_vm2, %v1185_v45  ;;  %1817 = vmatmul.msk.f32.vlgmr.msrb.gmra.mxu3 %vm712_vm2, %v1182_v15  ;;  %v1152_v54 = vmax.f32 %v1037_v34, 0.0  ;;  %v1168_v45 = vmax.f32 %v1085_v25, 0.0 }
 0x191   : > { %1318 = vmatpush.msra.mxu3 %v1137_v13 }
 0x193   : > { %1319 = vmatpush.msra.mxu3 %v1136_v48 }
 0x195   : > { %1320 = vmatpush.msra.mxu3 %v1135_v26  ;;  %v1039_v32 = vpop.f32.mrf.mxu2  ;;  %v1102_v20 = vpop.f32.mrf.mxu3 }
 0x196   : > { %v1040_v41 = vadd.f32 %v2204_v38, %v1039_v32  ;;  %v1100_v32 = vadd.f32 %v2204_v38, %v1099_v9  ;;  %v1103_v3 = vadd.f32 %v2204_v38, %v1102_v20  ;;  %v1548_v9 = vld [vmem:[%s2441_s9 + $0x10] sm:$0xff] }
 0x197   : > { %1321 = vmatpush.msra.mxu3 %v1134_v60 }
 0x198   : > { %v1153_v51 = vmax.f32 %v1040_v41, 0.0  ;;  %1819 = vmatmul.msk.f32.vlgmr.msra.gmra.mxu3 %vm712_vm2, %v1184_v16  ;;  %v1097_v41 = vadd.f32 %v2204_v38, %v1096_v49  ;;  %v1193_v49 = vrot.slane %v2344_v0, 7  ;;  %v1547_v16 = vld [vmem:[%s2441_s9 + $0x8] sm:$0xff] }
 0x199   : > { %1384 = vmatpush.msrb.mxu3 %v1149_v62 }
 0x19a   : > { %1406 = vmatpush.msrb.mxu0 %v1153_v51 }
 0x19b   : > { %1385 = vmatpush.msrb.mxu3 %v1148_v50 }
 0x19c   : > { %1407 = vmatpush.msrb.mxu0 %v1152_v54  ;;  %v1173_v54 = vmax.f32 %v1100_v32, 0.0 }
 0x19d   : > { %1386 = vmatpush.msrb.mxu3 %v1147_v52  ;;  %v1042_v1 = vpop.f32.mrf.mxu2  ;;  %v1105_v15 = vpop.f32.mrf.mxu3  ;;  %v1189_v52 = vrot.slane %v2344_v0, 3 }
 0x19e   : > { %1408 = vmatpush.msrb.mxu0 %v1151_v63  ;;  %v1043_v12 = vadd.f32 %v2204_v38, %v1042_v1  ;;  %v1190_v63 = vrot.slane %v2344_v0, 4  ;;  %v1172_v1 = vmax.f32 %v1097_v41, 0.0 }
 0x19f   : > { %1387 = vmatpush.msrb.mxu3 %v1146_v36 }
 0x1a0   : > { %1409 = vmatpush.msrb.mxu0 %v1150_v4  ;;  %1822 = vmatmul.msk.f32.vlgmr.msrb.gmra.mxu3 %vm712_vm2, %v2344_v0  ;;  %v1154_v35 = vmax.f32 %v1043_v12, 0.0  ;;  %v1106_v4 = vadd.f32 %v2204_v38, %v1105_v15 }
 0x1a1   : > { %1823 = vmatmul.msk.f32.vlgmr.msrb.gmra.mxu0 %vm712_vm2, %v1187_v46 }
 0x1a2   : > { %1472 = vmatpush.msra.mxu0 %v1165_v5  ;;  %v1171_v5 = vmax.f32 %v1094_v61, 0.0 }
 0x1a4   : > { %1473 = vmatpush.msra.mxu0 %v1164_v22  ;;  %v1170_v22 = vmax.f32 %v1091_v47, 0.0 }
 0x1a5   : > { %v1045_v24 = vpop.f32.mrf.mxu2  ;;  %v1108_v13 = vpop.f32.mrf.mxu3 }
 0x1a6   : > { %1474 = vmatpush.msra.mxu0 %v1163_v8  ;;  %v1046_v11 = vadd.f32 %v2204_v38, %v1045_v24  ;;  %v1109_v55 = vadd.f32 %v2204_v38, %v1108_v13  ;;  %v1175_v8 = vmax.f32 %v1106_v4, 0.0  ;;  %v1174_v24 = vmax.f32 %v1103_v3, 0.0 }
 0x1a8   : > { %v1155_v19 = vmax.f32 %v1046_v11, 0.0  ;;  %v1176_v39 = vmax.f32 %v1109_v55, 0.0 }
 0x1ad   : > { %v1048_v53 = vpop.f32.mrf.mxu2  ;;  %v1111_v60 = vpop.f32.mrf.mxu3 }
 0x1ae   : > { %v1049_v2 = vadd.f32 %v2204_v38, %v1048_v53  ;;  %v1112_v43 = vadd.f32 %v2204_v38, %v1111_v60 }
 0x1b0   : > { %v1156_v17 = vmax.f32 %v1049_v2, 0.0  ;;  %v1177_v56 = vmax.f32 %v1112_v43, 0.0  ;;  %v442_v2 = vld [vmem:[%s2393_s20] sm:$0xff] }
 0x1b5   : > { %v1051_v42 = vpop.f32.mrf.mxu2 }
 0x1b6   : > { %v1052_v23 = vadd.f32 %v2204_v38, %v1051_v42  ;;  %v1546_v42 = vld [vmem:[%s2441_s9] sm:$0xff] }
 0x1b8   : > { %v1157_v58 = vmax.f32 %v1052_v23, 0.0  ;;  %v1868_v23 = vmov 0  }
 0x1b9   : > { %1856 = vset.pattern.permute.xlu0 %v1868_v23 }
 0x1ba   : > { %1428 = vmatpush.msra.mxu1 %v1157_v58  ;;  %1553 = vperm.xlu0 %1856, %v442_v2  }
 0x1bc   : > { %1429 = vmatpush.msra.mxu1 %v1156_v17 }
 0x1bd   : > { %v1054_v30 = vpop.f32.mrf.mxu2  ;;  %v1213_v53 = vpop.f32.mrf.mxu3 }
 0x1be   : > { %1430 = vmatpush.msra.mxu1 %v1155_v19  ;;  %v1055_v21 = vadd.f32 %v2204_v38, %v1054_v30 }
 0x1c0   : > { %1431 = vmatpush.msra.mxu1 %v1154_v35  ;;  %v1158_v33 = vmax.f32 %v1055_v21, 0.0 }
 0x1c1   : > { %1824 = vmatmul.msk.f32.vlgmr.msra.gmra.mxu1 %vm712_vm2, %v1188_v40 }
 0x1c2   : > { %1494 = vmatpush.msrb.mxu1 %v1169_v44 }
 0x1c4   : > { %1495 = vmatpush.msrb.mxu1 %v1168_v45 }
 0x1c5   : > { %v1057_v59 = vpop.f32.mrf.mxu2 }
 0x1c6   : > { %1496 = vmatpush.msrb.mxu1 %v1167_v57  ;;  %v1058_v26 = vadd.f32 %v2204_v38, %v1057_v59 }
 0x1c8   : > { %1497 = vmatpush.msrb.mxu1 %v1166_v10  ;;  %v1159_v34 = vmax.f32 %v1058_v26, 0.0 }
 0x1c9   : > { %1827 = vmatmul.msk.f32.vlgmr.msrb.gmra.mxu1 %vm712_vm2, %v1191_v31 }
 0x1cd   : > { %v1060_v7 = vpop.f32.mrf.mxu2 }
 0x1ce   : > { %v1061_v48 = vadd.f32 %v2204_v38, %v1060_v7  ;;  %v443_v7 = vld [vmem:[%s2393_s20 + $0x8] sm:$0xff] }
 0x1cf   : > { %1558 = vperm.xlu0 %1856, %v443_v7  }
 0x1d0   : > { %v1160_v62 = vmax.f32 %v1061_v48, 0.0 }
 0x1d5   : > { %v1063_v14 = vpop.f32.mrf.mxu2 }
 0x1d6   : > { %v1064_v6 = vadd.f32 %v2204_v38, %v1063_v14 }
 0x1d8   : > { %v1161_v27 = vmax.f32 %v1064_v6, 0.0 }
 0x1da   : > { %1450 = vmatpush.msra.mxu3 %v1161_v27 }
 0x1dc   : > { %1451 = vmatpush.msra.mxu3 %v1160_v62 }
 0x1dd   : > { %v1066_v50 = vpop.f32.mrf.mxu2 }
 0x1de   : > { %v1067_v51 = vadd.f32 %v2204_v38, %v1066_v50  ;;  %1452 = vmatpush.msra.mxu3 %v1159_v34  ;;  %v1549_v38 = vld [vmem:[%s2441_s9 + $0x18] sm:$0xff] }
 0x1df   : > { %1633 = vmatpush.msra.mxu1 %v1549_v38  ;;  %v1235_v58 = vpop.f32.mrf.mxu3 }
 0x1e0   : > { %v1162_v36 = vmax.f32 %v1067_v51, 0.0  ;;  %1453 = vmatpush.msra.mxu3 %v1158_v33  ;;  %v1582_v0 = vrot.slane %v1235_v58, 7 }
 0x1e1   : > { %1825 = vmatmul.msk.f32.vlgmr.msra.gmra.mxu3 %vm712_vm2, %v1189_v52  ;;  %1634 = vmatpush.msra.mxu1 %v1548_v9 }
 0x1e2   : > { %1516 = vmatpush.msrb.mxu3 %v1173_v54  ;;  %1475 = vmatpush.msra.mxu0 %v1162_v36  ;;  %v1584_v20 = vsel %vm1583_vm3, %v1582_v0, %v1213_v53 }
 0x1e3   : > { %1826 = vmatmul.msk.f32.vlgmr.msra.gmra.mxu0 %vm712_vm2, %v1190_v63  ;;  %1635 = vmatpush.msra.mxu1 %v1547_v16  ;;  %v1859_v63 = vld [vmem:[%s2442_s10] ss:$0 sm:$0xff] }
 0x1e4   : > { %1517 = vmatpush.msrb.mxu3 %v1172_v1  ;;  %1538 = vmatpush.msrb.mxu0 %v1177_v56 }
 0x1e5   : > { %1636 = vmatpush.msra.mxu1 %v1546_v42 }
 0x1e6   : > { %1518 = vmatpush.msrb.mxu3 %v1171_v5  ;;  %1539 = vmatpush.msrb.mxu0 %v1176_v39 }
 0x1e8   : > { %1519 = vmatpush.msrb.mxu3 %v1170_v22  ;;  %1540 = vmatpush.msrb.mxu0 %v1175_v8 }
 0x1e9   : > { %1828 = vmatmul.msk.f32.vlgmr.msrb.gmra.mxu3 %vm712_vm2, %v1192_v28 }
 0x1ea   : > { %1541 = vmatpush.msrb.mxu0 %v1174_v24 }
 0x1eb   : > { %1829 = vmatmul.msk.f32.vlgmr.msrb.gmra.mxu0 %vm712_vm2, %v1193_v49 }
 0x1f7   : > { %v1257_v11 = vpop.f32.mrf.mxu0 }
 0x1f8   : > { %v1585_v17 = vrot.slane %v1257_v11, 6 }
 0x1f9   : > { %v1367_v44 = vpop.f32.mrf.mxu1 }
 0x1fa   : > { %v1587_v25 = vsel %vm1586_vm4, %v1585_v17, %v1584_v20  ;;  %v1600_v10 = vrot.slane %v1367_v44, 1 }
 0x1ff   : > { %v1301_v12 = vpop.f32.mrf.mxu0 }
 0x200   : > { %v1591_v30 = vrot.slane %v1301_v12, 4 }
 0x20d   : > { %v1345_v37 = vpop.f32.mrf.mxu0 }
 0x20e   : > { %v1597_v46 = vrot.slane %v1345_v37, 2 }
 0x213   : > { %v1279_v18 = vpop.f32.mrf.mxu3 }
 0x214   : > { %v1588_v19 = vrot.slane %v1279_v18, 5 }
 0x216   : > { %v1590_v35 = vsel %vm1589_vm5, %v1588_v19, %v1587_v25 }
 0x217   : > { %v1593_v29 = vsel %vm1592_vm6, %v1591_v30, %v1590_v35 }
 0x21b   : > { %v1323_v45 = vpop.f32.mrf.mxu3 }
 0x21c   : > { %v1594_v57 = vrot.slane %v1323_v45, 3 }
 0x21e   : > { %v1596_v59 = vsel %vm1595_vm7, %v1594_v57, %v1593_v29  ;;  %v1411_v31 = vpop.f32.mrf.mxu0 }
 0x21f   : > { %v1599_v15 = vsel %vm1598_vm8, %v1597_v46, %v1596_v59  ;;  %v1603_v48 = vrot.slane %v1411_v31, 7 }
 0x220   : > { %v1602_v40 = vsel %vm1601_vm9, %v1600_v10, %v1599_v15 }
 0x221   : > { %1830 = vmatmul.msk.f32.vlgmr.msra.gmra.mxu1 %vm712_vm2, %v1602_v40 }
 0x223   : > { %v1389_v13 = vpop.f32.mrf.mxu3 }
 0x224   : > { %v1604_v27 = vsel %vm1583_vm3, %v1603_v48, %v1389_v13 }
 0x22c   : > { %v1554_v47 = vpop.permute.xlu0 %1553 }
 0x22d   : > { %v1564_v1 = vmul.f32 %v1859_v63, %v1554_v47 }
 0x23e   : > { %v1433_v14 = vpop.f32.mrf.mxu1 }
 0x23f   : > { %v1605_v26 = vrot.slane %v1433_v14, 6 }
 0x241   : > { %v1606_v62 = vsel %vm1586_vm4, %v1605_v26, %v1604_v27  ;;  %v1559_v3 = vpop.permute.xlu0 %1558 }
 0x242   : > { %v1565_v39 = vmul.f32 %v1859_v63, %v1559_v3 }
 0x246   : > { %v1499_v34 = vpop.f32.mrf.mxu1 }
 0x247   : > { %v1611_v50 = vrot.slane %v1499_v34, 3 }
 0x260   : > { %v1477_v6 = vpop.f32.mrf.mxu0 }
 0x261   : > { %v1609_v32 = vrot.slane %v1477_v6, 4 }
 0x264   : > { %v1455_v60 = vpop.f32.mrf.mxu3 }
 0x265   : > { %v1607_v21 = vrot.slane %v1455_v60, 5 }
 0x267   : > { %v1608_v41 = vsel %vm1589_vm5, %v1607_v21, %v1606_v62 }
 0x268   : > { %v1543_v43 = vpop.f32.mrf.mxu0  ;;  %v1610_v33 = vsel %vm1592_vm6, %v1609_v32, %v1608_v41 }
 0x269   : > { %v1615_v52 = vrot.slane %v1543_v43, 1  ;;  %v1612_v54 = vsel %vm1595_vm7, %v1611_v50, %v1610_v33 }
 0x26c   : > { %v1521_v51 = vpop.f32.mrf.mxu3 }
 0x26d   : > { %v1613_v61 = vrot.slane %v1521_v51, 2 }
 0x26f   : > { %v1614_v55 = vsel %vm1598_vm8, %v1613_v61, %v1612_v54 }
 0x270   : > { %v1616_v36 = vsel %vm1601_vm9, %v1615_v52, %v1614_v55 }
 0x271   : > { %1831 = vmatmul.msk.f32.gmra.mxu1 %vm712_vm2, %v1616_v36 }
 0x29e   : > { %v1638_v4 = vpop.f32.mrf.mxu1 }
 0x29f   : > { %v1639_v56 = vadd.f32 %v1638_v4, %v1564_v1 }
 0x2a1   : > { %v1644_v5 = vmax.f32 %v1639_v56, 0.0 }
 0x2a3   : > { %1647 = vst.msk [vmem:[%s432_s13] sm:$0xff] %vm1646_vm10, %v1644_v5 }
 0x2ee   : > { %v1641_v22 = vpop.f32.mrf.mxu1 }
 0x2ef   : > { %v1642_v8 = vadd.f32 %v1641_v22, %v1565_v39 }
 0x2f1   : > { %v1645_v28 = vmax.f32 %v1642_v8, 0.0 }
 0x2f3   : > { %1648 = vst.msk [vmem:[%s432_s13 + $0x8] sm:$0xff] %vm1646_vm10, %v1645_v28 }
 0x2f4 PF: > { %s21_s17 = sadd.s32 1, %s1866_s17  }
 0x2f5   : > { %p18_p4 = scmp.ge.s32.totalorder %s21_s17, 4  }
 0x2f7   :  { %20 = sbr.rel (!%p18_p4) target bundleno = 1 (0x1), region = 100 }

</bundles_post_ra>
